<compile_context>
chip_gen: v6e
topology: v6e:2x2x1
jax: 0.10.0
libtpu: 0.0.40
codegen_flags: <defaults>
</compile_context>

<pallas_src>
import functools

import jax
import jax.numpy as jnp
from jax.experimental import pallas as pl
from jax.experimental.pallas import tpu as pltpu


# Config values mirroring cfg.patch_len / cfg.sliding_window.
PATCH_LEN = 16        # cfg.patch_len       ('d' in 'b h c (s d)')
SLIDING_WINDOW = 8    # cfg.sliding_window  (step = sliding_window // 2)


# ---------------------------------------------------------------------------
# Pallas kernel: one grid step == one batch element
# ---------------------------------------------------------------------------

def _tokenizer_kernel(x_ref, o_ref, *, H, C, S, P, W, step, nw):
    # x_ref : (1, H, C, T)    input block, T = S * P
    # o_ref : (nw, W, P, C)   all sliding windows for this batch element
    for h in range(H):
        # (C, T) -> (T, C): the einops '... c (s d) -> ... (d c)' relayout,
        # done as a plain 2-D minor-dim transpose (XLU).
        xh_t = x_ref[0, h].T                       # (S*P, C)
        for s in range(S):
            tok = h * S + s                        # patch-token index in [0, H*S)
            patch = xh_t[s * P:(s + 1) * P, :]     # (P, C) == one token
            # Scatter this token into every sliding window that contains it
            # (windows overlap by W - step, so each token lands in <= W//step).
            for w in range(nw):
                j = tok - w * step
                if 0 <= j < W:
                    o_ref[w, j] = patch


# ---------------------------------------------------------------------------
# Wrapper (Tokenizer.forward)
# ---------------------------------------------------------------------------

def tokenizer_forward(x, patch_len=PATCH_LEN, sliding_window=SLIDING_WINDOW):
    """x : (B, H, C, T) -> (tokens (B*nw, sliding_window, patch_len*C), B)."""
    B, H, C, T = x.shape
    P = patch_len
    W = sliding_window
    step = W // 2
    assert T % P == 0, "time dim must be a multiple of patch_len"
    S = T // P
    D1 = H * S                        # number of patch tokens per batch element
    assert D1 >= W, "need at least one sliding window"
    nw = (D1 - W) // step + 1
    # TODO(synk): cfg.seq_len_hlt = nw is a Python config side effect in the
    # original module; here nw is just computed in the wrapper.

    kernel = functools.partial(
        _tokenizer_kernel, H=H, C=C, S=S, P=P, W=W, step=step, nw=nw)

    out4 = pl.pallas_call(
        kernel,
        out_shape=jax.ShapeDtypeStruct((B * nw, W, P, C), x.dtype),
        grid_spec=pltpu.PrefetchScalarGridSpec(
            num_scalar_prefetch=0,
            grid=(B,),
            in_specs=[pl.BlockSpec((1, H, C, T), lambda b: (b, 0, 0, 0))],
            out_specs=pl.BlockSpec((nw, W, P, C), lambda b: (b, 0, 0, 0)),
        ),
        compiler_params=pltpu.CompilerParams(
            dimension_semantics=("parallel",)),
    )(x)

    # (B*nw, W, P, C) -> (B*nw, W, P*C): contiguous trailing-dim collapse
    # (zero-copy in XLA); gives the lane-dense final layout.
    out = out4.reshape(B * nw, W, P * C)
    return out, B


# ---------------------------------------------------------------------------
# Pure-JAX reference (mirrors the torch ops exactly) for a sanity check
# ---------------------------------------------------------------------------

def reference_tokenizer(x, patch_len, sliding_window):
    B, H, C, T = x.shape
    P, W = patch_len, sliding_window
    step = W // 2
    S = T // P
    # Patching: 'b h c (s d) -> (b h s) (d c)' ; then '(b d) s -> b d s'
    t = x.reshape(B, H, C, S, P).transpose(0, 1, 3, 4, 2).reshape(B, H * S, P * C)
    # 'b (d n) s -> b d (n s)', n=1 is a no-op.
    nw = (H * S - W) // step + 1
    idx = (jnp.arange(nw) * step)[:, None] + jnp.arange(W)[None, :]   # (nw, W)
    u = t[:, idx, :]                                                  # (B, nw, W, P*C)
    # torch unfold -> (B, nw, P*C, W); 'b d s c -> (b d) c s' -> (B*nw, W, P*C)
    return u.reshape(B * nw, W, P * C), B


# ---------------------------------------------------------------------------
# Main
# ---------------------------------------------------------------------------

if __name__ == "__main__":
    B, H, C = 2, 2, 8
    S = 8
    T = S * PATCH_LEN                         # 128

    x = jax.random.normal(jax.random.PRNGKey(0), (B, H, C, T), jnp.float32)

    out, b = tokenizer_forward(x)
    out = jax.block_until_ready(out)

    ref_out, ref_b = reference_tokenizer(x, PATCH_LEN, SLIDING_WINDOW)
    nw = (H * S - SLIDING_WINDOW) // (SLIDING_WINDOW // 2) + 1

    assert b == B == ref_b
    assert out.shape == (B * nw, SLIDING_WINDOW, PATCH_LEN * C)
    # Pure data movement -> results must match bit-exactly.
    assert jnp.array_equal(out, ref_out)

    print("KERNEL_OK")
</pallas_src>

<mosaic_0001>
module attributes {stable_mosaic.version = 11 : i64} {
  func.func @_tokenizer_kernel(%arg0: i32, %arg1: memref<1x2x8x128xf32, #tpu.memory_space<vmem>>, %arg2: memref<3x8x16x8xf32, #tpu.memory_space<vmem>>) attributes {dimension_semantics = [#tpu.dimension_semantics<parallel>], iteration_bounds = array<i64: 2>, scalar_prefetch = 0 : i64, scratch_operands = 0 : i64, tpu.core_type = #tpu.core_type<tc>, window_params = [{transform_indices = @transform_0, window_bounds = array<i64: 1, 2, 8, 128>}, {transform_indices = @transform_1, window_bounds = array<i64: 3, 8, 16, 8>}]} {
    %c0 = arith.constant 0 : index
    %c0_0 = arith.constant 0 : index
    %c0_1 = arith.constant 0 : index
    %c0_2 = arith.constant 0 : index
    %0 = vector.load %arg1[%c0, %c0_0, %c0_1, %c0_2] : memref<1x2x8x128xf32, #tpu.memory_space<vmem>>, vector<1x1x8x128xf32>
    %1 = vector.shape_cast %0 : vector<1x1x8x128xf32> to vector<8x128xf32>
    %2 = tpu.transpose %1, [1, 0] : vector<8x128xf32> -> vector<128x8xf32>
    %3 = vector.extract_strided_slice %2 {offsets = [0, 0], sizes = [16, 8], strides = [1, 1]} : vector<128x8xf32> to vector<16x8xf32>
    %c0_3 = arith.constant 0 : index
    %c0_4 = arith.constant 0 : index
    %c0_5 = arith.constant 0 : index
    %c0_6 = arith.constant 0 : index
    %4 = vector.load %arg2[%c0_3, %c0_4, %c0_5, %c0_6] : memref<3x8x16x8xf32, #tpu.memory_space<vmem>>, vector<1x1x16x8xf32>
    %5 = vector.shape_cast %4 : vector<1x1x16x8xf32> to vector<16x8xf32>
    %6 = vector.shape_cast %3 : vector<16x8xf32> to vector<1x1x16x8xf32>
    tpu.vector_store %arg2[%c0_3, %c0_4, %c0_5, %c0_6], %6 {strides = array<i32>} : memref<3x8x16x8xf32, #tpu.memory_space<vmem>>, vector<1x1x16x8xf32>,
    %7 = vector.extract_strided_slice %2 {offsets = [16, 0], sizes = [16, 8], strides = [1, 1]} : vector<128x8xf32> to vector<16x8xf32>
    %c0_7 = arith.constant 0 : index
    %c1 = arith.constant 1 : index
    %c0_8 = arith.constant 0 : index
    %c0_9 = arith.constant 0 : index
    %8 = vector.load %arg2[%c0_7, %c1, %c0_8, %c0_9] : memref<3x8x16x8xf32, #tpu.memory_space<vmem>>, vector<1x1x16x8xf32>
    %9 = vector.shape_cast %8 : vector<1x1x16x8xf32> to vector<16x8xf32>
    %10 = vector.shape_cast %7 : vector<16x8xf32> to vector<1x1x16x8xf32>
    tpu.vector_store %arg2[%c0_7, %c1, %c0_8, %c0_9], %10 {strides = array<i32>} : memref<3x8x16x8xf32, #tpu.memory_space<vmem>>, vector<1x1x16x8xf32>,
    %11 = vector.extract_strided_slice %2 {offsets = [32, 0], sizes = [16, 8], strides = [1, 1]} : vector<128x8xf32> to vector<16x8xf32>
    %c0_10 = arith.constant 0 : index
    %c2 = arith.constant 2 : index
    %c0_11 = arith.constant 0 : index
    %c0_12 = arith.constant 0 : index
    %12 = vector.load %arg2[%c0_10, %c2, %c0_11, %c0_12] : memref<3x8x16x8xf32, #tpu.memory_space<vmem>>, vector<1x1x16x8xf32>
    %13 = vector.shape_cast %12 : vector<1x1x16x8xf32> to vector<16x8xf32>
    %14 = vector.shape_cast %11 : vector<16x8xf32> to vector<1x1x16x8xf32>
    tpu.vector_store %arg2[%c0_10, %c2, %c0_11, %c0_12], %14 {strides = array<i32>} : memref<3x8x16x8xf32, #tpu.memory_space<vmem>>, vector<1x1x16x8xf32>,
    %15 = vector.extract_strided_slice %2 {offsets = [48, 0], sizes = [16, 8], strides = [1, 1]} : vector<128x8xf32> to vector<16x8xf32>
    %c0_13 = arith.constant 0 : index
    %c3 = arith.constant 3 : index
    %c0_14 = arith.constant 0 : index
    %c0_15 = arith.constant 0 : index
    %16 = vector.load %arg2[%c0_13, %c3, %c0_14, %c0_15] : memref<3x8x16x8xf32, #tpu.memory_space<vmem>>, vector<1x1x16x8xf32>
    %17 = vector.shape_cast %16 : vector<1x1x16x8xf32> to vector<16x8xf32>
    %18 = vector.shape_cast %15 : vector<16x8xf32> to vector<1x1x16x8xf32>
    tpu.vector_store %arg2[%c0_13, %c3, %c0_14, %c0_15], %18 {strides = array<i32>} : memref<3x8x16x8xf32, #tpu.memory_space<vmem>>, vector<1x1x16x8xf32>,
    %19 = vector.extract_strided_slice %2 {offsets = [64, 0], sizes = [16, 8], strides = [1, 1]} : vector<128x8xf32> to vector<16x8xf32>
    %c0_16 = arith.constant 0 : index
    %c4 = arith.constant 4 : index
    %c0_17 = arith.constant 0 : index
    %c0_18 = arith.constant 0 : index
    %20 = vector.load %arg2[%c0_16, %c4, %c0_17, %c0_18] : memref<3x8x16x8xf32, #tpu.memory_space<vmem>>, vector<1x1x16x8xf32>
    %21 = vector.shape_cast %20 : vector<1x1x16x8xf32> to vector<16x8xf32>
    %22 = vector.shape_cast %19 : vector<16x8xf32> to vector<1x1x16x8xf32>
    tpu.vector_store %arg2[%c0_16, %c4, %c0_17, %c0_18], %22 {strides = array<i32>} : memref<3x8x16x8xf32, #tpu.memory_space<vmem>>, vector<1x1x16x8xf32>,
    %c1_19 = arith.constant 1 : index
    %c0_20 = arith.constant 0 : index
    %c0_21 = arith.constant 0 : index
    %c0_22 = arith.constant 0 : index
    %23 = vector.load %arg2[%c1_19, %c0_20, %c0_21, %c0_22] : memref<3x8x16x8xf32, #tpu.memory_space<vmem>>, vector<1x1x16x8xf32>
    %24 = vector.shape_cast %23 : vector<1x1x16x8xf32> to vector<16x8xf32>
    %25 = vector.shape_cast %19 : vector<16x8xf32> to vector<1x1x16x8xf32>
    tpu.vector_store %arg2[%c1_19, %c0_20, %c0_21, %c0_22], %25 {strides = array<i32>} : memref<3x8x16x8xf32, #tpu.memory_space<vmem>>, vector<1x1x16x8xf32>,
    %26 = vector.extract_strided_slice %2 {offsets = [80, 0], sizes = [16, 8], strides = [1, 1]} : vector<128x8xf32> to vector<16x8xf32>
    %c0_23 = arith.constant 0 : index
    %c5 = arith.constant 5 : index
    %c0_24 = arith.constant 0 : index
    %c0_25 = arith.constant 0 : index
    %27 = vector.load %arg2[%c0_23, %c5, %c0_24, %c0_25] : memref<3x8x16x8xf32, #tpu.memory_space<vmem>>, vector<1x1x16x8xf32>
    %28 = vector.shape_cast %27 : vector<1x1x16x8xf32> to vector<16x8xf32>
    %29 = vector.shape_cast %26 : vector<16x8xf32> to vector<1x1x16x8xf32>
    tpu.vector_store %arg2[%c0_23, %c5, %c0_24, %c0_25], %29 {strides = array<i32>} : memref<3x8x16x8xf32, #tpu.memory_space<vmem>>, vector<1x1x16x8xf32>,
    %c1_26 = arith.constant 1 : index
    %c1_27 = arith.constant 1 : index
    %c0_28 = arith.constant 0 : index
    %c0_29 = arith.constant 0 : index
    %30 = vector.load %arg2[%c1_26, %c1_27, %c0_28, %c0_29] : memref<3x8x16x8xf32, #tpu.memory_space<vmem>>, vector<1x1x16x8xf32>
    %31 = vector.shape_cast %30 : vector<1x1x16x8xf32> to vector<16x8xf32>
    %32 = vector.shape_cast %26 : vector<16x8xf32> to vector<1x1x16x8xf32>
    tpu.vector_store %arg2[%c1_26, %c1_27, %c0_28, %c0_29], %32 {strides = array<i32>} : memref<3x8x16x8xf32, #tpu.memory_space<vmem>>, vector<1x1x16x8xf32>,
    %33 = vector.extract_strided_slice %2 {offsets = [96, 0], sizes = [16, 8], strides = [1, 1]} : vector<128x8xf32> to vector<16x8xf32>
    %c0_30 = arith.constant 0 : index
    %c6 = arith.constant 6 : index
    %c0_31 = arith.constant 0 : index
    %c0_32 = arith.constant 0 : index
    %34 = vector.load %arg2[%c0_30, %c6, %c0_31, %c0_32] : memref<3x8x16x8xf32, #tpu.memory_space<vmem>>, vector<1x1x16x8xf32>
    %35 = vector.shape_cast %34 : vector<1x1x16x8xf32> to vector<16x8xf32>
    %36 = vector.shape_cast %33 : vector<16x8xf32> to vector<1x1x16x8xf32>
    tpu.vector_store %arg2[%c0_30, %c6, %c0_31, %c0_32], %36 {strides = array<i32>} : memref<3x8x16x8xf32, #tpu.memory_space<vmem>>, vector<1x1x16x8xf32>,
    %c1_33 = arith.constant 1 : index
    %c2_34 = arith.constant 2 : index
    %c0_35 = arith.constant 0 : index
    %c0_36 = arith.constant 0 : index
    %37 = vector.load %arg2[%c1_33, %c2_34, %c0_35, %c0_36] : memref<3x8x16x8xf32, #tpu.memory_space<vmem>>, vector<1x1x16x8xf32>
    %38 = vector.shape_cast %37 : vector<1x1x16x8xf32> to vector<16x8xf32>
    %39 = vector.shape_cast %33 : vector<16x8xf32> to vector<1x1x16x8xf32>
    tpu.vector_store %arg2[%c1_33, %c2_34, %c0_35, %c0_36], %39 {strides = array<i32>} : memref<3x8x16x8xf32, #tpu.memory_space<vmem>>, vector<1x1x16x8xf32>,
    %40 = vector.extract_strided_slice %2 {offsets = [112, 0], sizes = [16, 8], strides = [1, 1]} : vector<128x8xf32> to vector<16x8xf32>
    %c0_37 = arith.constant 0 : index
    %c7 = arith.constant 7 : index
    %c0_38 = arith.constant 0 : index
    %c0_39 = arith.constant 0 : index
    %41 = vector.load %arg2[%c0_37, %c7, %c0_38, %c0_39] : memref<3x8x16x8xf32, #tpu.memory_space<vmem>>, vector<1x1x16x8xf32>
    %42 = vector.shape_cast %41 : vector<1x1x16x8xf32> to vector<16x8xf32>
    %43 = vector.shape_cast %40 : vector<16x8xf32> to vector<1x1x16x8xf32>
    tpu.vector_store %arg2[%c0_37, %c7, %c0_38, %c0_39], %43 {strides = array<i32>} : memref<3x8x16x8xf32, #tpu.memory_space<vmem>>, vector<1x1x16x8xf32>,
    %c1_40 = arith.constant 1 : index
    %c3_41 = arith.constant 3 : index
    %c0_42 = arith.constant 0 : index
    %c0_43 = arith.constant 0 : index
    %44 = vector.load %arg2[%c1_40, %c3_41, %c0_42, %c0_43] : memref<3x8x16x8xf32, #tpu.memory_space<vmem>>, vector<1x1x16x8xf32>
    %45 = vector.shape_cast %44 : vector<1x1x16x8xf32> to vector<16x8xf32>
    %46 = vector.shape_cast %40 : vector<16x8xf32> to vector<1x1x16x8xf32>
    tpu.vector_store %arg2[%c1_40, %c3_41, %c0_42, %c0_43], %46 {strides = array<i32>} : memref<3x8x16x8xf32, #tpu.memory_space<vmem>>, vector<1x1x16x8xf32>,
    %c0_44 = arith.constant 0 : index
    %c1_45 = arith.constant 1 : index
    %c0_46 = arith.constant 0 : index
    %c0_47 = arith.constant 0 : index
    %47 = vector.load %arg1[%c0_44, %c1_45, %c0_46, %c0_47] : memref<1x2x8x128xf32, #tpu.memory_space<vmem>>, vector<1x1x8x128xf32>
    %48 = vector.shape_cast %47 : vector<1x1x8x128xf32> to vector<8x128xf32>
    %49 = tpu.transpose %48, [1, 0] : vector<8x128xf32> -> vector<128x8xf32>
    %50 = vector.extract_strided_slice %49 {offsets = [0, 0], sizes = [16, 8], strides = [1, 1]} : vector<128x8xf32> to vector<16x8xf32>
    %c1_48 = arith.constant 1 : index
    %c4_49 = arith.constant 4 : index
    %c0_50 = arith.constant 0 : index
    %c0_51 = arith.constant 0 : index
    %51 = vector.load %arg2[%c1_48, %c4_49, %c0_50, %c0_51] : memref<3x8x16x8xf32, #tpu.memory_space<vmem>>, vector<1x1x16x8xf32>
    %52 = vector.shape_cast %51 : vector<1x1x16x8xf32> to vector<16x8xf32>
    %53 = vector.shape_cast %50 : vector<16x8xf32> to vector<1x1x16x8xf32>
    tpu.vector_store %arg2[%c1_48, %c4_49, %c0_50, %c0_51], %53 {strides = array<i32>} : memref<3x8x16x8xf32, #tpu.memory_space<vmem>>, vector<1x1x16x8xf32>,
    %c2_52 = arith.constant 2 : index
    %c0_53 = arith.constant 0 : index
    %c0_54 = arith.constant 0 : index
    %c0_55 = arith.constant 0 : index
    %54 = vector.load %arg2[%c2_52, %c0_53, %c0_54, %c0_55] : memref<3x8x16x8xf32, #tpu.memory_space<vmem>>, vector<1x1x16x8xf32>
    %55 = vector.shape_cast %54 : vector<1x1x16x8xf32> to vector<16x8xf32>
    %56 = vector.shape_cast %50 : vector<16x8xf32> to vector<1x1x16x8xf32>
    tpu.vector_store %arg2[%c2_52, %c0_53, %c0_54, %c0_55], %56 {strides = array<i32>} : memref<3x8x16x8xf32, #tpu.memory_space<vmem>>, vector<1x1x16x8xf32>,
    %57 = vector.extract_strided_slice %49 {offsets = [16, 0], sizes = [16, 8], strides = [1, 1]} : vector<128x8xf32> to vector<16x8xf32>
    %c1_56 = arith.constant 1 : index
    %c5_57 = arith.constant 5 : index
    %c0_58 = arith.constant 0 : index
    %c0_59 = arith.constant 0 : index
    %58 = vector.load %arg2[%c1_56, %c5_57, %c0_58, %c0_59] : memref<3x8x16x8xf32, #tpu.memory_space<vmem>>, vector<1x1x16x8xf32>
    %59 = vector.shape_cast %58 : vector<1x1x16x8xf32> to vector<16x8xf32>
    %60 = vector.shape_cast %57 : vector<16x8xf32> to vector<1x1x16x8xf32>
    tpu.vector_store %arg2[%c1_56, %c5_57, %c0_58, %c0_59], %60 {strides = array<i32>} : memref<3x8x16x8xf32, #tpu.memory_space<vmem>>, vector<1x1x16x8xf32>,
    %c2_60 = arith.constant 2 : index
    %c1_61 = arith.constant 1 : index
    %c0_62 = arith.constant 0 : index
    %c0_63 = arith.constant 0 : index
    %61 = vector.load %arg2[%c2_60, %c1_61, %c0_62, %c0_63] : memref<3x8x16x8xf32, #tpu.memory_space<vmem>>, vector<1x1x16x8xf32>
    %62 = vector.shape_cast %61 : vector<1x1x16x8xf32> to vector<16x8xf32>
    %63 = vector.shape_cast %57 : vector<16x8xf32> to vector<1x1x16x8xf32>
    tpu.vector_store %arg2[%c2_60, %c1_61, %c0_62, %c0_63], %63 {strides = array<i32>} : memref<3x8x16x8xf32, #tpu.memory_space<vmem>>, vector<1x1x16x8xf32>,
    %64 = vector.extract_strided_slice %49 {offsets = [32, 0], sizes = [16, 8], strides = [1, 1]} : vector<128x8xf32> to vector<16x8xf32>
    %c1_64 = arith.constant 1 : index
    %c6_65 = arith.constant 6 : index
    %c0_66 = arith.constant 0 : index
    %c0_67 = arith.constant 0 : index
    %65 = vector.load %arg2[%c1_64, %c6_65, %c0_66, %c0_67] : memref<3x8x16x8xf32, #tpu.memory_space<vmem>>, vector<1x1x16x8xf32>
    %66 = vector.shape_cast %65 : vector<1x1x16x8xf32> to vector<16x8xf32>
    %67 = vector.shape_cast %64 : vector<16x8xf32> to vector<1x1x16x8xf32>
    tpu.vector_store %arg2[%c1_64, %c6_65, %c0_66, %c0_67], %67 {strides = array<i32>} : memref<3x8x16x8xf32, #tpu.memory_space<vmem>>, vector<1x1x16x8xf32>,
    %c2_68 = arith.constant 2 : index
    %c2_69 = arith.constant 2 : index
    %c0_70 = arith.constant 0 : index
    %c0_71 = arith.constant 0 : index
    %68 = vector.load %arg2[%c2_68, %c2_69, %c0_70, %c0_71] : memref<3x8x16x8xf32, #tpu.memory_space<vmem>>, vector<1x1x16x8xf32>
    %69 = vector.shape_cast %68 : vector<1x1x16x8xf32> to vector<16x8xf32>
    %70 = vector.shape_cast %64 : vector<16x8xf32> to vector<1x1x16x8xf32>
    tpu.vector_store %arg2[%c2_68, %c2_69, %c0_70, %c0_71], %70 {strides = array<i32>} : memref<3x8x16x8xf32, #tpu.memory_space<vmem>>, vector<1x1x16x8xf32>,
    %71 = vector.extract_strided_slice %49 {offsets = [48, 0], sizes = [16, 8], strides = [1, 1]} : vector<128x8xf32> to vector<16x8xf32>
    %c1_72 = arith.constant 1 : index
    %c7_73 = arith.constant 7 : index
    %c0_74 = arith.constant 0 : index
    %c0_75 = arith.constant 0 : index
    %72 = vector.load %arg2[%c1_72, %c7_73, %c0_74, %c0_75] : memref<3x8x16x8xf32, #tpu.memory_space<vmem>>, vector<1x1x16x8xf32>
    %73 = vector.shape_cast %72 : vector<1x1x16x8xf32> to vector<16x8xf32>
    %74 = vector.shape_cast %71 : vector<16x8xf32> to vector<1x1x16x8xf32>
    tpu.vector_store %arg2[%c1_72, %c7_73, %c0_74, %c0_75], %74 {strides = array<i32>} : memref<3x8x16x8xf32, #tpu.memory_space<vmem>>, vector<1x1x16x8xf32>,
    %c2_76 = arith.constant 2 : index
    %c3_77 = arith.constant 3 : index
    %c0_78 = arith.constant 0 : index
    %c0_79 = arith.constant 0 : index
    %75 = vector.load %arg2[%c2_76, %c3_77, %c0_78, %c0_79] : memref<3x8x16x8xf32, #tpu.memory_space<vmem>>, vector<1x1x16x8xf32>
    %76 = vector.shape_cast %75 : vector<1x1x16x8xf32> to vector<16x8xf32>
    %77 = vector.shape_cast %71 : vector<16x8xf32> to vector<1x1x16x8xf32>
    tpu.vector_store %arg2[%c2_76, %c3_77, %c0_78, %c0_79], %77 {strides = array<i32>} : memref<3x8x16x8xf32, #tpu.memory_space<vmem>>, vector<1x1x16x8xf32>,
    %78 = vector.extract_strided_slice %49 {offsets = [64, 0], sizes = [16, 8], strides = [1, 1]} : vector<128x8xf32> to vector<16x8xf32>
    %c2_80 = arith.constant 2 : index
    %c4_81 = arith.constant 4 : index
    %c0_82 = arith.constant 0 : index
    %c0_83 = arith.constant 0 : index
    %79 = vector.load %arg2[%c2_80, %c4_81, %c0_82, %c0_83] : memref<3x8x16x8xf32, #tpu.memory_space<vmem>>, vector<1x1x16x8xf32>
    %80 = vector.shape_cast %79 : vector<1x1x16x8xf32> to vector<16x8xf32>
    %81 = vector.shape_cast %78 : vector<16x8xf32> to vector<1x1x16x8xf32>
    tpu.vector_store %arg2[%c2_80, %c4_81, %c0_82, %c0_83], %81 {strides = array<i32>} : memref<3x8x16x8xf32, #tpu.memory_space<vmem>>, vector<1x1x16x8xf32>,
    %82 = vector.extract_strided_slice %49 {offsets = [80, 0], sizes = [16, 8], strides = [1, 1]} : vector<128x8xf32> to vector<16x8xf32>
    %c2_84 = arith.constant 2 : index
    %c5_85 = arith.constant 5 : index
    %c0_86 = arith.constant 0 : index
    %c0_87 = arith.constant 0 : index
    %83 = vector.load %arg2[%c2_84, %c5_85, %c0_86, %c0_87] : memref<3x8x16x8xf32, #tpu.memory_space<vmem>>, vector<1x1x16x8xf32>
    %84 = vector.shape_cast %83 : vector<1x1x16x8xf32> to vector<16x8xf32>
    %85 = vector.shape_cast %82 : vector<16x8xf32> to vector<1x1x16x8xf32>
    tpu.vector_store %arg2[%c2_84, %c5_85, %c0_86, %c0_87], %85 {strides = array<i32>} : memref<3x8x16x8xf32, #tpu.memory_space<vmem>>, vector<1x1x16x8xf32>,
    %86 = vector.extract_strided_slice %49 {offsets = [96, 0], sizes = [16, 8], strides = [1, 1]} : vector<128x8xf32> to vector<16x8xf32>
    %c2_88 = arith.constant 2 : index
    %c6_89 = arith.constant 6 : index
    %c0_90 = arith.constant 0 : index
    %c0_91 = arith.constant 0 : index
    %87 = vector.load %arg2[%c2_88, %c6_89, %c0_90, %c0_91] : memref<3x8x16x8xf32, #tpu.memory_space<vmem>>, vector<1x1x16x8xf32>
    %88 = vector.shape_cast %87 : vector<1x1x16x8xf32> to vector<16x8xf32>
    %89 = vector.shape_cast %86 : vector<16x8xf32> to vector<1x1x16x8xf32>
    tpu.vector_store %arg2[%c2_88, %c6_89, %c0_90, %c0_91], %89 {strides = array<i32>} : memref<3x8x16x8xf32, #tpu.memory_space<vmem>>, vector<1x1x16x8xf32>,
    %90 = vector.extract_strided_slice %49 {offsets = [112, 0], sizes = [16, 8], strides = [1, 1]} : vector<128x8xf32> to vector<16x8xf32>
    %c2_92 = arith.constant 2 : index
    %c7_93 = arith.constant 7 : index
    %c0_94 = arith.constant 0 : index
    %c0_95 = arith.constant 0 : index
    %91 = vector.load %arg2[%c2_92, %c7_93, %c0_94, %c0_95] : memref<3x8x16x8xf32, #tpu.memory_space<vmem>>, vector<1x1x16x8xf32>
    %92 = vector.shape_cast %91 : vector<1x1x16x8xf32> to vector<16x8xf32>
    %93 = vector.shape_cast %90 : vector<16x8xf32> to vector<1x1x16x8xf32>
    tpu.vector_store %arg2[%c2_92, %c7_93, %c0_94, %c0_95], %93 {strides = array<i32>} : memref<3x8x16x8xf32, #tpu.memory_space<vmem>>, vector<1x1x16x8xf32>,
    return
  }
  func.func @transform_0(%arg0: i32) -> (i32, i32, i32, i32) {
    %c0_i32 = arith.constant 0 : i32
    %c0_i32_0 = arith.constant 0 : i32
    %c0_i32_1 = arith.constant 0 : i32
    %c0_i32_2 = arith.constant 0 : i32
    return %arg0, %c0_i32, %c0_i32_0, %c0_i32_1 : i32, i32, i32, i32
  }
  func.func @transform_1(%arg0: i32) -> (i32, i32, i32, i32) {
    %c0_i32 = arith.constant 0 : i32
    %c0_i32_0 = arith.constant 0 : i32
    %c0_i32_1 = arith.constant 0 : i32
    %c0_i32_2 = arith.constant 0 : i32
    return %arg0, %c0_i32, %c0_i32_0, %c0_i32_1 : i32, i32, i32, i32
  }
}

</mosaic_0001>

<bundles_post_ra>
// kernel: tpu_custom_call.1
= control target key start
LH: loop header
LB: loop body
LE: loop exit
PB: predicated region body
PF: predicated region fallthrough
CT: control target
= control target key end

     0   :  { %6 = vsyncpa [#allocation3], 0  ;;  %s727_s0 = inlined_call_operand.hbm [shape: f32[2,2,8,128], index: 0, kind: input, shape index: {}]   ;;  %s728_s1 = inlined_call_operand.vmem [shape: f32[6,8,16,8], index: 1, kind: output, shape index: {}]  }
   0x1   :  { %8 = vsyncpa [#allocation3 + $0x1], 0  ;;  %s529_s6 = smov 0   ;;  %s531_s7 = smov 0  }
   0x2   :  { %s533_s8 = smov 0   ;;  %s535_s9 = smov 0  }
   0x3 LB: > { %s348_s10 = sadd.s32 4294967295, %s514_s9   ;;  %s549_s11 = sadd.s32 1, %s514_s9   ;;  %s514_s9 = sphi %s535_s9, %s737_s9   ;;  %s510_s8 = sphi %s533_s8, %s736_s8   ;;  %s506_s7 = sphi %s531_s7, %s735_s7   ;;  %s502_s6 = sphi %s529_s6, %s734_s6  }
   0x4   : > { %s18_s12 = ssub.s32 %s514_s9, %s549_s11  ;;  %s21_s13 = sadd.s32 1, %s510_s8 }
   0x5   : > { %p19_p0 = scmp.eq.s32.totalorder %s18_s12, 0  ;;  %p28_p1 = scmp.ne.s32.totalorder %s510_s8, %s506_s7 }
   0x6   : > { %p29_p2 = scmp.eq.s32.totalorder %s514_s9, 0  ;;  %p34_p3 = scmp.ne.s32.totalorder %s506_s7, %s502_s6 }
   0x7   : > { %s559_s14 = scalar_select %p19_p0, %s510_s8, %s21_s13  }
   0x8   : > { %p30_p4 = por %p29_p2, %p28_p1  ;;  %p35_p5 = scmp.eq.s32.totalorder %s348_s10, 0 }
   0x9   : > { %p416_p6 = scmp.lt.s32.totalorder %s514_s9, 2  ;;  %s84_s16 = sand.u32 1, %s510_s8  }
   0xa   : > { %p564_p7 = por %p35_p5, %p34_p3  ;;  %s352_s17 = sshll.u32 %s84_s16, 4 }
   0xb   : > { %s408_s18 = sshll.u32 %s514_s9, 8  ;;  %s88_s22 = scalar_lea.vmem [#allocation2], %s352_s17 }
   0xc   : > { %s730_s15 = scalar_select %p564_p7, 1, 0 }
   0xd   : > { %s573_s21 = scalar_lea.hbm %s727_s0, %s408_s18  ;;  %s95_s23 = sshll.u32 %s88_s22, 4  ;;  %s575_s23 = int_to_ptr.vmem [resolvable:$true] %s95_s23 }
   0xe   : > { %p577_p8 = pnand %p416_p6, %p30_p4  ;;  %s582_s25 = scalar_lea.sflag [#allocation3], %s84_s16 }
   0xf   : > { %s452_s26 = scalar_lea.hbm %s573_s21, 256  ;;  %s457_s29 = scalar_lea.hbm %s727_s0, 512 }
  0x10   : > { %p453_p10 = scmp.ne.s32.totalorder %s573_s21, %s452_s26  ;;  %p454_p11 = pneg %p577_p8 }
  0x11   : > { %p458_p0 = scmp.lt.s32.totalorder %s573_s21, %s727_s0  ;;  %p459_p1 = scmp.lt.s32.totalorder %s457_s29, %s452_s26 }
  0x12   : > { %p455_p12 = pnand %p454_p11, %p453_p10 }
  0x13   : > { %p460_p2 = por %p459_p1, %p458_p0 }
  0x14   : > { %p456_p13 = pneg %p455_p12 }
  0x16   : > { %p461_p3 = pnand %p460_p2, %p456_p13 }
  0x18   : > { %464 = shalt.err (!%p461_p3)
}
  0x19   : > { %s465_s3 = scalar_lea.vmem %s575_s23, 256  ;;  %s516_s4 = smov [#allocation2]  }
  0x1a   : > { %p466_p4 = scmp.ne.s32.totalorder %s575_s23, %s465_s3  ;;  %s470_s5 = sshll.u32 %s516_s4, 4  ;;  %s471_s5 = int_to_ptr.vmem [resolvable:$false] %s470_s5 }
  0x1b   : > { %s472_s6 = scalar_lea.vmem %s471_s5, 512  ;;  %p473_p10 = scmp.lt.s32.totalorder %s575_s23, %s471_s5 }
  0x1c   : > { %p468_p5 = pnand %p466_p4, %p454_p11  ;;  %p474_p12 = scmp.lt.s32.totalorder %s472_s6, %s465_s3 }
  0x1e   : > { %p469_p6 = pneg %p468_p5  ;;  %p475_p9 = por %p474_p12, %p473_p10 }
  0x20   : > { %p476_p7 = pnand %p475_p9, %p469_p6 }
  0x22   : > { %479 = shalt.err (!%p476_p7)
}
  0x23   : > { %s517_s12 = smov 128   ;;  %s518_s13 = smov 8  }
  0x24   : > { %415 = dma.hbm_to_vmem [thread:$0]  (!%p577_p8), %s573_s21, 256, %s575_s23, %s582_s25, %s517_s12, %s517_s12, %s518_s13  }
  0x25   : > { %p103_p11 = scmp.lt.s32.totalorder %s514_s9, 3  ;;  %p732_p13 = scmp.ge.s32.totalorder %s514_s9, 1 }
  0x27   : > { %p104_p0 = pnand %p732_p13, %p103_p11 }
  0x28   : > { %s109_s16 = sand.u32 (!%p104_p0), 1, %s506_s7   ;;  %p733_p7 = scmp.ne.s32.totalorder (!%p104_p0), %s730_s15, 0 }
  0x29   : > { %107 = sbr.rel (%p104_p0) target bundleno = 298 (0x12a), region = 24  ;;  %s356_s17 = sshll.u32 (!%p104_p0), %s109_s16, 4 }
  0x2a   : > { %s110_s18 = scalar_lea.sflag (!%p104_p0), [#allocation3], %s109_s16  ;;  %s113_s19 = scalar_lea.vmem (!%p104_p0), [#allocation2], %s356_s17 }
  0x2e   : > { %497 = dma.done.wait (%p733_p7), %s110_s18, 256  }
  0x2f   : > { %499 = vsyncadd (%p733_p7), %s110_s18, 4294967040  ;;  %v140_v0 = vld [vmem:[%s113_s19] sm:$0xff]  ;;  %v381_v1 = vld [vmem:[%s113_s19 + $0x8] sm:$0xff]  ;;  %s133_s20 = smul.u32 3, %s348_s10  ;;  %vm173_vm0 = vcmask 64512  }
  0x30   : > { %141 = vxpose.xlu0.b32.start.end [1/1] (short) %v140_v0, 128 }
  0x31   : > { %p134_p8 = scmp.lt.s32.totalorder %s133_s20, 5 }
  0x33   : > { %s739_s20 = smov (!%p134_p8, %s133_s20), 5 }
  0x34   : > { %s409_s21 = sshll.u32 %s739_s20, 7 }
  0x35   : > { %s616_s24 = scalar_lea.vmem %s728_s1, %s409_s21 }
  0x6d   : > { %211 = vxpose.xlu0.b32.start.end [1/1] (short) %v381_v1, 128 }
  0xac   : > { %v157_v2 = vpop.trf.xlu0 }
  0xad   : > { %174 = vst.msk [vmem:[%s616_s24] sm:$0xff] %vm173_vm0, %v157_v2 }
  0xb0   : > { %v158_v3 = vpop.trf.xlu0 }
  0xb1   : > { %175 = vst.msk [vmem:[%s616_s24 + $0x8] sm:$0xff] %vm173_vm0, %v158_v3 }
  0xb4   : > { %v159_v4 = vpop.trf.xlu0 }
  0xb5   : > { %359 = vst.msk [vmem:[%s616_s24 + $0x10] sm:$0xff] %vm173_vm0, %v159_v4 }
  0xb8   : > { %v160_v5 = vpop.trf.xlu0 }
  0xb9   : > { %360 = vst.msk [vmem:[%s616_s24 + $0x18] sm:$0xff] %vm173_vm0, %v160_v5 }
  0xbc   : > { %v161_v6 = vpop.trf.xlu0 }
  0xbd   : > { %361 = vst.msk [vmem:[%s616_s24 + $0x20] sm:$0xff] %vm173_vm0, %v161_v6 }
  0xc0   : > { %v162_v7 = vpop.trf.xlu0 }
  0xc1   : > { %362 = vst.msk [vmem:[%s616_s24 + $0x28] sm:$0xff] %vm173_vm0, %v162_v7 }
  0xc4   : > { %v163_v8 = vpop.trf.xlu0 }
  0xc5   : > { %363 = vst.msk [vmem:[%s616_s24 + $0x30] sm:$0xff] %vm173_vm0, %v163_v8 }
  0xc8   : > { %v164_v9 = vpop.trf.xlu0 }
  0xc9   : > { %364 = vst.msk [vmem:[%s616_s24 + $0x38] sm:$0xff] %vm173_vm0, %v164_v9 }
  0xcc   : > { %v165_v10 = vpop.trf.xlu0 }
  0xcd   : > { %365 = vst.msk [vmem:[%s616_s24 + $0x40] sm:$0xff] %vm173_vm0, %v165_v10  ;;  %367 = vst.msk [vmem:[%s616_s24 + $0x80] sm:$0xff] %vm173_vm0, %v165_v10 }
  0xd0   : > { %v166_v11 = vpop.trf.xlu0 }
  0xd1   : > { %366 = vst.msk [vmem:[%s616_s24 + $0x48] sm:$0xff] %vm173_vm0, %v166_v11  ;;  %368 = vst.msk [vmem:[%s616_s24 + $0x88] sm:$0xff] %vm173_vm0, %v166_v11 }
  0xd4   : > { %v167_v12 = vpop.trf.xlu0 }
  0xd5   : > { %369 = vst.msk [vmem:[%s616_s24 + $0x50] sm:$0xff] %vm173_vm0, %v167_v12  ;;  %371 = vst.msk [vmem:[%s616_s24 + $0x90] sm:$0xff] %vm173_vm0, %v167_v12 }
  0xd8   : > { %v168_v13 = vpop.trf.xlu0 }
  0xd9   : > { %370 = vst.msk [vmem:[%s616_s24 + $0x58] sm:$0xff] %vm173_vm0, %v168_v13  ;;  %372 = vst.msk [vmem:[%s616_s24 + $0x98] sm:$0xff] %vm173_vm0, %v168_v13 }
  0xdc   : > { %v169_v14 = vpop.trf.xlu0 }
  0xdd   : > { %373 = vst.msk [vmem:[%s616_s24 + $0x60] sm:$0xff] %vm173_vm0, %v169_v14  ;;  %375 = vst.msk [vmem:[%s616_s24 + $0xa0] sm:$0xff] %vm173_vm0, %v169_v14 }
  0xe0   : > { %v170_v15 = vpop.trf.xlu0 }
  0xe1   : > { %374 = vst.msk [vmem:[%s616_s24 + $0x68] sm:$0xff] %vm173_vm0, %v170_v15  ;;  %376 = vst.msk [vmem:[%s616_s24 + $0xa8] sm:$0xff] %vm173_vm0, %v170_v15 }
  0xe4   : > { %v171_v16 = vpop.trf.xlu0 }
  0xe5   : > { %377 = vst.msk [vmem:[%s616_s24 + $0x70] sm:$0xff] %vm173_vm0, %v171_v16  ;;  %379 = vst.msk [vmem:[%s616_s24 + $0xb0] sm:$0xff] %vm173_vm0, %v171_v16 }
  0xe8   : > { %v172_v17 = vpop.trf.xlu0 }
  0xe9   : > { %378 = vst.msk [vmem:[%s616_s24 + $0x78] sm:$0xff] %vm173_vm0, %v172_v17  ;;  %380 = vst.msk [vmem:[%s616_s24 + $0xb8] sm:$0xff] %vm173_vm0, %v172_v17 }
  0xec   : > { %v227_v18 = vpop.trf.xlu0 }
  0xed   : > { %382 = vst.msk [vmem:[%s616_s24 + $0xc0] sm:$0xff] %vm173_vm0, %v227_v18  ;;  %384 = vst.msk [vmem:[%s616_s24 + $0x100] sm:$0xff] %vm173_vm0, %v227_v18 }
  0xf0   : > { %v228_v19 = vpop.trf.xlu0 }
  0xf1   : > { %383 = vst.msk [vmem:[%s616_s24 + $0xc8] sm:$0xff] %vm173_vm0, %v228_v19  ;;  %385 = vst.msk [vmem:[%s616_s24 + $0x108] sm:$0xff] %vm173_vm0, %v228_v19 }
  0xf4   : > { %v229_v20 = vpop.trf.xlu0 }
  0xf5   : > { %386 = vst.msk [vmem:[%s616_s24 + $0xd0] sm:$0xff] %vm173_vm0, %v229_v20  ;;  %388 = vst.msk [vmem:[%s616_s24 + $0x110] sm:$0xff] %vm173_vm0, %v229_v20 }
  0xf8   : > { %v230_v21 = vpop.trf.xlu0 }
  0xf9   : > { %387 = vst.msk [vmem:[%s616_s24 + $0xd8] sm:$0xff] %vm173_vm0, %v230_v21  ;;  %389 = vst.msk [vmem:[%s616_s24 + $0x118] sm:$0xff] %vm173_vm0, %v230_v21 }
  0xfc   : > { %v231_v22 = vpop.trf.xlu0 }
  0xfd   : > { %390 = vst.msk [vmem:[%s616_s24 + $0xe0] sm:$0xff] %vm173_vm0, %v231_v22  ;;  %392 = vst.msk [vmem:[%s616_s24 + $0x120] sm:$0xff] %vm173_vm0, %v231_v22 }
 0x100   : > { %v232_v23 = vpop.trf.xlu0 }
 0x101   : > { %391 = vst.msk [vmem:[%s616_s24 + $0xe8] sm:$0xff] %vm173_vm0, %v232_v23  ;;  %393 = vst.msk [vmem:[%s616_s24 + $0x128] sm:$0xff] %vm173_vm0, %v232_v23 }
 0x104   : > { %v233_v24 = vpop.trf.xlu0 }
 0x105   : > { %394 = vst.msk [vmem:[%s616_s24 + $0xf0] sm:$0xff] %vm173_vm0, %v233_v24  ;;  %396 = vst.msk [vmem:[%s616_s24 + $0x130] sm:$0xff] %vm173_vm0, %v233_v24 }
 0x108   : > { %v234_v25 = vpop.trf.xlu0 }
 0x109   : > { %395 = vst.msk [vmem:[%s616_s24 + $0xf8] sm:$0xff] %vm173_vm0, %v234_v25  ;;  %397 = vst.msk [vmem:[%s616_s24 + $0x138] sm:$0xff] %vm173_vm0, %v234_v25 }
 0x10c   : > { %v235_v26 = vpop.trf.xlu0 }
 0x10d   : > { %398 = vst.msk [vmem:[%s616_s24 + $0x140] sm:$0xff] %vm173_vm0, %v235_v26 }
 0x110   : > { %v236_v27 = vpop.trf.xlu0 }
 0x111   : > { %399 = vst.msk [vmem:[%s616_s24 + $0x148] sm:$0xff] %vm173_vm0, %v236_v27 }
 0x114   : > { %v237_v28 = vpop.trf.xlu0 }
 0x115   : > { %400 = vst.msk [vmem:[%s616_s24 + $0x150] sm:$0xff] %vm173_vm0, %v237_v28 }
 0x118   : > { %v238_v29 = vpop.trf.xlu0 }
 0x119   : > { %401 = vst.msk [vmem:[%s616_s24 + $0x158] sm:$0xff] %vm173_vm0, %v238_v29 }
 0x11c   : > { %v239_v30 = vpop.trf.xlu0 }
 0x11d   : > { %402 = vst.msk [vmem:[%s616_s24 + $0x160] sm:$0xff] %vm173_vm0, %v239_v30 }
 0x120   : > { %v240_v31 = vpop.trf.xlu0 }
 0x121   : > { %403 = vst.msk [vmem:[%s616_s24 + $0x168] sm:$0xff] %vm173_vm0, %v240_v31 }
 0x124   : > { %v241_v32 = vpop.trf.xlu0 }
 0x125   : > { %404 = vst.msk [vmem:[%s616_s24 + $0x170] sm:$0xff] %vm173_vm0, %v241_v32 }
 0x128   : > { %v242_v33 = vpop.trf.xlu0 }
 0x129   : > { %405 = vst.msk [vmem:[%s616_s24 + $0x178] sm:$0xff] %vm173_vm0, %v242_v33 }
 0x12a PF: > { %p11_p9 = scmp.ge.s32.totalorder %s549_s11, 4   ;;  %s734_s6 = smov %s506_s7 }
 0x12b   : > { %s735_s7 = smov %s510_s8  ;;  %s736_s8 = smov %s559_s14 }
 0x12c   : > { %s737_s9 = smov %s549_s11  ;;  %13 = sbr.rel (!%p11_p9) target bundleno = 3 (0x3), region = 88 }
 0x131   :  { %303 = vsyncpa [#allocation3], 1 }
 0x132   :  { %305 = vsyncpa [#allocation3 + $0x1], 1 }

</bundles_post_ra>
